<compile_context>
chip_gen: v6e
topology: v6e:2x2x1
jax: 0.10.0
libtpu: 0.0.40
codegen_flags: <defaults>
</compile_context>

<pallas_src>
import jax
import jax.numpy as jnp
from jax import lax
from jax.experimental import pallas as pl
from jax.experimental.pallas import tpu as pltpu


def _round_up(x, m):
    return ((x + m - 1) // m) * m


def filer_kernel(x_ref, wt_ref, b_ref, val_ref, idx_ref):
    # x_ref:   (TM, D)     f32  one row tile of the flattened encoder output
    # wt_ref:  (R, D)      f32  head weight, pre-transposed; grid-resident
    # b_ref:   (R, 1)      f32  head bias as a column; grid-resident
    # val_ref: (1, 1, TM)  f32  max of softmax over R (rows on the lane axis)
    # idx_ref: (1, 1, TM)  i32  argmax (first occurrence, torch.max semantics)
    x = x_ref[...]
    wt = wt_ref[...]
    b = b_ref[...]

    # Transposed logits (R, TM):  out[r, m] = sum_d wt[r, d] * x[m, d].
    # Contraction over the last dim of both operands == the attention q @ k^T
    # pattern, so the MXU takes the (TM, D) tile as-is (no VMEM transpose).
    logits_t = lax.dot_general(
        wt, x,
        dimension_numbers=(((1,), (1,)), ((), ())),
        preferred_element_type=jnp.float32,
    ) + b                                              # bias broadcast over lanes

    r = logits_t.shape[0]

    # max(softmax(z)) = 1 / sum(exp(z - max(z))); the element at the max
    # contributes exp(0) == 1.0 exactly, so this matches computing the full
    # softmax and taking its max.
    m = jnp.max(logits_t, axis=0, keepdims=True)       # (1, TM) sublane reduce
    e = jnp.exp(logits_t - m)                          # dense vregs on the EUP
    denom = jnp.sum(e, axis=0, keepdims=True)          # (1, TM) sublane reduce
    val = pl.reciprocal(denom, approx=False)           # exact: keep 1e-5 accuracy

    # argmax(softmax(z)) == argmax(z); first index of the max (torch.max
    # semantics).  Comparing logits against their own max is exact.
    iota = lax.broadcasted_iota(jnp.int32, logits_t.shape, 0)
    idx = jnp.min(jnp.where(logits_t == m, iota, r), axis=0, keepdims=True)

    val_ref[...] = val.reshape(val_ref.shape)
    idx_ref[...] = idx.reshape(idx_ref.shape)


def filer_forward(encoder_out, weight, bias, *, tm=16384):
    """encoder_out: (B, S, D) f32; weight: (D, R) f32; bias: (R,) f32.

    Returns (values, indices), each of shape (B, S) — the result of
    torch.max(softmax(head(encoder_out), dim=2), dim=2).
    """
    B, S, D = encoder_out.shape
    R = weight.shape[1]
    M = B * S

    # Row-tile sizing:
    #  * big tiles amortize the ~0.35 us per-grid-step overhead,
    #  * cap at 32768 so the double-buffered x slab (2*tm*D*4B) stays under
    #    v5e's 16 MiB scoped-VMEM default,
    #  * keep >= 2 tiles when there is enough work so the "parallel" row axis
    #    can split across v7x's 2 TensorCores,
    #  * clamp/align to the (8-row aligned) problem size for small inputs;
    #    Pallas handles the partial tail tile, wrapper slices the padding off.
    tm = min(tm, 32768)
    if M >= 2048:
        tm = min(tm, _round_up(pl.cdiv(M, 2), 512))
    tm = min(tm, _round_up(M, 8))
    tm = max(_round_up(tm, 8), 8)
    G = pl.cdiv(M, tm)

    x2d = encoder_out.reshape(M, D)
    wt = weight.T                      # (R, D): tiny, transposed once in XLA
    b_col = bias.reshape(R, 1)

    cost = pl.CostEstimate(
        flops=2 * M * D * R,
        transcendentals=M * R,
        bytes_accessed=M * D * 4 + D * R * 4 + R * 4 + M * 4 + M * 4,
    )

    vals, idxs = pl.pallas_call(
        filer_kernel,
        out_shape=(
            jax.ShapeDtypeStruct((G, 1, tm), jnp.float32),
            jax.ShapeDtypeStruct((G, 1, tm), jnp.int32),
        ),
        grid_spec=pl.GridSpec(
            grid=(G,),
            in_specs=[
                pl.BlockSpec((tm, D), lambda i: (i, 0)),   # x: tiled over rows
                pl.BlockSpec((R, D), lambda i: (0, 0)),    # weight^T: resident
                pl.BlockSpec((R, 1), lambda i: (0, 0)),    # bias: resident
            ],
            out_specs=(
                pl.BlockSpec((1, 1, tm), lambda i: (i, 0, 0)),  # lane-dense
                pl.BlockSpec((1, 1, tm), lambda i: (i, 0, 0)),  # lane-dense
            ),
        ),
        compiler_params=pltpu.CompilerParams(
            dimension_semantics=("parallel",),   # megacore sharding on v7x
        ),
        cost_estimate=cost,
    )(x2d, wt, b_col)

    # Drop the tail padding (garbage lanes from the partial last tile).
    vals = vals.reshape(G * tm)[:M].reshape(B, S)
    idxs = idxs.reshape(G * tm)[:M].reshape(B, S)
    return vals, idxs


if __name__ == "__main__":
    # Small shapes consistent with the module: dim(hidden)=32, max_repeat=16
    B, S, D, R = 2, 8, 32, 16

    key = jax.random.PRNGKey(0)
    k_x, k_w, k_b = jax.random.split(key, 3)

    encoder_out = jax.random.normal(k_x, (B, S, D), dtype=jnp.float32)
    # Deterministic "Linear(dim, max_repeat)" parameters (synthetic init)
    weight = jax.random.normal(k_w, (D, R), dtype=jnp.float32) * (1.0 / jnp.sqrt(D))
    bias = jax.random.normal(k_b, (R,), dtype=jnp.float32) * 0.01

    values, indices = filer_forward(encoder_out, weight, bias)
    jax.block_until_ready((values, indices))

    # Pure-JAX reference check
    ref_logits = encoder_out @ weight + bias
    ref_probs = jax.nn.softmax(ref_logits, axis=2)
    ref_vals = jnp.max(ref_probs, axis=2)
    ref_idx = jnp.argmax(ref_probs, axis=2).astype(jnp.int32)

    assert jnp.allclose(values, ref_vals, atol=1e-5, rtol=1e-5)
    assert jnp.array_equal(indices, ref_idx)

    print("KERNEL_OK")
</pallas_src>

<mosaic_0001>
module attributes {stable_mosaic.version = 11 : i64} {
  func.func @filer_kernel(%arg0: i32, %arg1: memref<16x32xf32, #tpu.memory_space<vmem>>, %arg2: memref<16x32xf32, #tpu.memory_space<vmem>>, %arg3: memref<16x1xf32, #tpu.memory_space<vmem>>, %arg4: memref<1x1x16xf32, #tpu.memory_space<vmem>>, %arg5: memref<1x1x16xi32, #tpu.memory_space<vmem>>) attributes {dimension_semantics = [#tpu.dimension_semantics<parallel>], iteration_bounds = array<i64: 1>, scalar_prefetch = 0 : i64, scratch_operands = 0 : i64, tpu.core_type = #tpu.core_type<tc>, window_params = [{transform_indices = @transform_0, window_bounds = array<i64: 16, 32>}, {pipeline_mode = #tpu.pipeline_mode<synchronous>, transform_indices = @transform_1, window_bounds = array<i64: 16, 32>}, {pipeline_mode = #tpu.pipeline_mode<synchronous>, transform_indices = @transform_2, window_bounds = array<i64: 16, 1>}, {transform_indices = @transform_3, window_bounds = array<i64: 1, 1, 16>}, {transform_indices = @transform_4, window_bounds = array<i64: 1, 1, 16>}]} {
    %c0 = arith.constant 0 : index
    %c0_0 = arith.constant 0 : index
    %0 = vector.load %arg1[%c0, %c0_0] : memref<16x32xf32, #tpu.memory_space<vmem>>, vector<16x32xf32>
    %c0_1 = arith.constant 0 : index
    %c0_2 = arith.constant 0 : index
    %1 = vector.load %arg2[%c0_1, %c0_2] : memref<16x32xf32, #tpu.memory_space<vmem>>, vector<16x32xf32>
    %c0_3 = arith.constant 0 : index
    %c0_4 = arith.constant 0 : index
    %2 = vector.load %arg3[%c0_3, %c0_4] : memref<16x1xf32, #tpu.memory_space<vmem>>, vector<16x1xf32>
    %cst = arith.constant dense<0.000000e+00> : vector<16x16xf32>
    %3 = tpu.matmul %1, %0, %cst {dimension_numbers = #tpu.dot_dimension_numbers<[1], [1], [0], [0], [0, 0, 1, 0], [], []>} : vector<16x32xf32>, vector<16x32xf32>, vector<16x16xf32> -> vector<16x16xf32>
    %4 = vector.broadcast %2 : vector<16x1xf32> to vector<16x16xf32>
    %5 = arith.addf %3, %4 : vector<16x16xf32>
    %cst_5 = arith.constant dense<0xFF800000> : vector<16xf32>
    %6 = vector.multi_reduction <maximumf>, %5, %cst_5 [0] : vector<16x16xf32> to vector<16xf32>
    %7 = vector.shape_cast %6 : vector<16xf32> to vector<1x16xf32>
    %8 = vector.broadcast %7 : vector<1x16xf32> to vector<16x16xf32>
    %9 = arith.subf %5, %8 : vector<16x16xf32>
    %10 = math.exp %9 : vector<16x16xf32>
    %cst_6 = arith.constant dense<0.000000e+00> : vector<16xf32>
    %11 = vector.multi_reduction <add>, %10, %cst_6 [0] : vector<16x16xf32> to vector<16xf32>
    %12 = vector.shape_cast %11 : vector<16xf32> to vector<1x16xf32>
    %13 = tpu.reciprocal %12 : vector<1x16xf32> -> vector<1x16xf32>
    %14 = tpu.iota {dimensions = array<i32: 0>} : vector<16x16xi32>
    %15 = vector.broadcast %7 : vector<1x16xf32> to vector<16x16xf32>
    %16 = arith.cmpf oeq, %5, %15 : vector<16x16xf32>
    %c16_i32 = arith.constant 16 : i32
    %17 = vector.broadcast %c16_i32 : i32 to vector<16x16xi32>
    %18 = arith.select %16, %14, %17 : vector<16x16xi1>, vector<16x16xi32>
    %cst_7 = arith.constant dense<2147483647> : vector<16xi32>
    %19 = vector.multi_reduction <minsi>, %18, %cst_7 [0] : vector<16x16xi32> to vector<16xi32>
    %20 = vector.shape_cast %19 : vector<16xi32> to vector<1x16xi32>
    %21 = vector.shape_cast %13 : vector<1x16xf32> to vector<1x1x16xf32>
    %c0_8 = arith.constant 0 : index
    %c0_9 = arith.constant 0 : index
    %c0_10 = arith.constant 0 : index
    %22 = vector.load %arg4[%c0_8, %c0_9, %c0_10] : memref<1x1x16xf32, #tpu.memory_space<vmem>>, vector<1x1x16xf32>
    tpu.vector_store %arg4[%c0_8, %c0_9, %c0_10], %21 {strides = array<i32>} : memref<1x1x16xf32, #tpu.memory_space<vmem>>, vector<1x1x16xf32>,
    %23 = vector.shape_cast %20 : vector<1x16xi32> to vector<1x1x16xi32>
    %c0_11 = arith.constant 0 : index
    %c0_12 = arith.constant 0 : index
    %c0_13 = arith.constant 0 : index
    %24 = vector.load %arg5[%c0_11, %c0_12, %c0_13] : memref<1x1x16xi32, #tpu.memory_space<vmem>>, vector<1x1x16xi32>
    tpu.vector_store %arg5[%c0_11, %c0_12, %c0_13], %23 {strides = array<i32>} : memref<1x1x16xi32, #tpu.memory_space<vmem>>, vector<1x1x16xi32>,
    return
  }
  func.func @transform_0(%arg0: i32) -> (i32, i32) {
    %c0_i32 = arith.constant 0 : i32
    %c0_i32_0 = arith.constant 0 : i32
    return %arg0, %c0_i32 : i32, i32
  }
  func.func @transform_1(%arg0: i32) -> (i32, i32) {
    %c0_i32 = arith.constant 0 : i32
    %c0_i32_0 = arith.constant 0 : i32
    %c0_i32_1 = arith.constant 0 : i32
    return %c0_i32, %c0_i32_0 : i32, i32
  }
  func.func @transform_2(%arg0: i32) -> (i32, i32) {
    %c0_i32 = arith.constant 0 : i32
    %c0_i32_0 = arith.constant 0 : i32
    %c0_i32_1 = arith.constant 0 : i32
    return %c0_i32, %c0_i32_0 : i32, i32
  }
  func.func @transform_3(%arg0: i32) -> (i32, i32, i32) {
    %c0_i32 = arith.constant 0 : i32
    %c0_i32_0 = arith.constant 0 : i32
    %c0_i32_1 = arith.constant 0 : i32
    return %arg0, %c0_i32, %c0_i32_0 : i32, i32, i32
  }
  func.func @transform_4(%arg0: i32) -> (i32, i32, i32) {
    %c0_i32 = arith.constant 0 : i32
    %c0_i32_0 = arith.constant 0 : i32
    %c0_i32_1 = arith.constant 0 : i32
    return %arg0, %c0_i32, %c0_i32_0 : i32, i32, i32
  }
}

</mosaic_0001>

<bundles_post_ra>
// kernel: tpu_custom_call.1
= control target key start
LH: loop header
LB: loop body
LE: loop exit
PB: predicated region body
PF: predicated region fallthrough
CT: control target
= control target key end

     0   :  { %10 = vsyncpa [#allocation3], 0  ;;  %s368_s0 = inlined_call_operand.vmem [shape: f32[16,32], index: 0, kind: input, shape index: {}]   ;;  %s369_s1 = inlined_call_operand.hbm [shape: f32[16,32], index: 1, kind: input, shape index: {}]   ;;  %s370_s2 = inlined_call_operand.vmem [shape: f32[16,1], index: 2, kind: input, shape index: {}]   ;;  %s371_s3 = inlined_call_operand.hbm [shape: f32[1,1,16], index: 3, kind: output, shape index: {0}]   ;;  %s372_s4 = inlined_call_operand.hbm [shape: s32[1,1,16], index: 4, kind: output, shape index: {1}]  }
   0x1   :  { %11 = vsyncpa [#allocation4], 0 }
   0x2   :  { %12 = vsyncpa [#allocation7], 0  ;;  %s308_s15 = smov [#allocation2]  }
   0x3   :  { %s20_s16 = sshll.u32 %s308_s15, 4  ;;  %s21_s16 = int_to_ptr.vmem [resolvable:$true] %s20_s16 }
   0x4   :  { %s250_s17 = scalar_lea.vmem %s21_s16, 256  ;;  %p255_p1 = scmp.lt.s32.totalorder %s21_s16, %s21_s16 }
   0x5   :  { %p251_p0 = scmp.ne.s32.totalorder %s21_s16, %s250_s17  ;;  %p256_p2 = scmp.lt.s32.totalorder %s250_s17, %s250_s17 }
   0x7   :  { %p257_p3 = por %p256_p2, %p255_p1 }
   0x9   :  { %p258_p4 = pnand %p257_p3, %p251_p0 }
   0xb   :  { %261 = shalt.err (!%p258_p4)
}
   0xc   :  { %s309_s18 = smov 128   ;;  %s310_s19 = smov 8  }
   0xd   :  { %26 = dma.hbm_to_vmem [thread:$0]  %s369_s1, 256, %s21_s16, [#allocation3], %s309_s18, %s309_s18, %s310_s19  }
   0xe   :  { %302 = dma.done.wait [#allocation3], 256  }
   0xf   :  { %303 = vsyncadd [#allocation3], 4294967040  ;;  %v311_v0 = vmov 0   ;;  %vm48_vm0 = vcmask 261120   ;;  %v33_v1 = vld [vmem:[%s368_s0 + $0x8] sm:$0xff]  ;;  %v32_v2 = vld [vmem:[%s368_s0] sm:$0xff]  ;;  %v162_v17 = vlaneseq }
  0x10   :  { %235 = vset.pattern.permute.xlu0 %v311_v0  ;;  %v34_v3 = vld [vmem:[#allocation2] sm:$0xff]  ;;  %222 = vmatprep.subr.msk.mxu0 %vm48_vm0, %v33_v1  ;;  %v37_v5 = vld [vmem:[%s370_s2 + $0x8] sm:$0xff]  ;;  %vm136_vm1 = vcmask 130048   ;;  %s312_s0 = smov [#allocation6]   ;;  %vm182_vm7 = vcmask 122880  }
  0x11   :  { %226 = vmatprep.mubr.msk.f32.mxu0 %vm48_vm0, %v34_v3  ;;  %v36_v4 = vld [vmem:[%s370_s2] sm:$0xff]  ;;  %223 = vmatpush3.xpose.msk.msra.mxu0 %vm48_vm0, %v33_v1  ;;  %v35_v6 = vld [vmem:[#allocation2 + $0x8] sm:$0xff]  ;;  %v163_v20 = vshrl.u32 %v162_v17, 7  ;;  %s201_s2 = sshll.u32 %s312_s0, 4  ;;  %s202_s2 = int_to_ptr.vmem [resolvable:$true] %s201_s2 }
  0x12   :  { %40 = vperm.xlu0 %235, %v36_v4   ;;  %224 = vmatprep.subr.msk.mxu0 %vm48_vm0, %v32_v2  ;;  %s262_s29 = scalar_lea.vmem %s202_s2, 16  ;;  %s266_s30 = scalar_lea.vmem %s202_s2, 32 }
  0x13   :  { %v164_v23 = vadd.s32 8, %v163_v20  ;;  %p263_p5 = scmp.ne.s32.totalorder %s202_s2, %s262_s29  ;;  %p267_p6 = scmp.lt.s32.totalorder %s202_s2, %s202_s2 }
  0x14   :  { %p268_p7 = scmp.lt.s32.totalorder %s266_s30, %s262_s29 }
  0x15   :  { %225 = vmatpush3.xpose.msk.msra.mxu0 %vm48_vm0, %v32_v2 }
  0x16   :  { %45 = vperm.xlu0 %235, %v37_v5   ;;  %p269_p8 = por %p268_p7, %p267_p6 }
  0x18   :  { %227 = vmatmul.mubr.msk.f32.vlgmr.msra.gmra.mxu0 %vm48_vm0, %v35_v6  ;;  %p270_p9 = pnand %p269_p8, %p263_p5 }
  0x8d   :  { %v41_v7 = vpop.permute.xlu0 %40 }
  0x91   :  { %v46_v8 = vpop.permute.xlu0 %45 }
  0xd8   :  { %v228_v9 = vpop.f32.mrf.mxu0 }
  0xd9   :  { %v133_v10 = vadd.f32 %v228_v9, %v46_v8 }
  0xda   :  { %v127_v11 = vpop.f32.mrf.mxu0 }
  0xdb   :  { %v128_v12 = vadd.f32 %v127_v11, %v41_v7  ;;  %v138_v13 = vsel %vm136_vm1, %v133_v10, -inf }
  0xdd   :  { %v137_v14 = vsel %vm136_vm1, %v128_v12, -inf }
  0xde   :  { %v139_v15 = vmax.f32 %v137_v14, %v138_v13 }
  0xe0   :  { %v140_v16 = vrot.slane %v139_v15, 4 }
  0xe2   :  { %v141_v18 = vmax.f32 %v139_v15, %v140_v16 }
  0xe4   :  { %v142_v19 = vrot.slane %v141_v18, 2 }
  0xe6   :  { %v143_v21 = vmax.f32 %v141_v18, %v142_v19 }
  0xe8   :  { %v144_v22 = vrot.slane %v143_v21, 1 }
  0xea   :  { %v145_v24 = vmax.f32 %v143_v21, %v144_v22 }
  0xec   :  { %v146_v25 = vsub.f32 %v128_v12, %v145_v24  ;;  %v147_v26 = vsub.f32 %v133_v10, %v145_v24  ;;  %vm165_vm2 = vcmp.eq.f32.partialorder %v128_v12, %v145_v24  ;;  %vm166_vm3 = vcmp.eq.f32.partialorder %v133_v10, %v145_v24 }
  0xed   :  { %v167_v27 = vsel %vm165_vm2, %v163_v20, 16  ;;  %v168_v28 = vsel %vm166_vm3, %v164_v23, 16 }
  0xee   :  { %v148_v29 = vmul.f32 1.442695, %v146_v25  ;;  %v150_v30 = vmul.f32 1.442695, %v147_v26  ;;  %v169_v31 = vsel %vm136_vm1, %v167_v27, 2147483647 }
  0xef   :  { %v170_v32 = vsel %vm136_vm1, %v168_v28, 2147483647 }
  0xf0   :  { %236 = vpow2.f32 %v148_v29  ;;  %vm171_vm4 = vcmp.lt.s32.totalorder %v169_v31, %v170_v32 }
  0xf1   :  { %238 = vpow2.f32 %v150_v30  ;;  %v172_v33 = vsel %vm171_vm4, %v169_v31, %v170_v32 }
  0xf2   :  { %v173_v34 = vrot.slane %v172_v33, 4 }
  0xf4   :  { %vm174_vm5 = vcmp.lt.s32.totalorder %v172_v33, %v173_v34 }
  0xf5   :  { %v175_v35 = vsel %vm174_vm5, %v172_v33, %v173_v34 }
  0xf6   :  { %v176_v36 = vrot.slane %v175_v35, 2 }
  0xf8   :  { %vm177_vm6 = vcmp.lt.s32.totalorder %v175_v35, %v176_v36 }
  0xf9   :  { %v178_v37 = vsel %vm177_vm6, %v175_v35, %v176_v36 }
  0xfa   :  { %v179_v38 = vrot.slane %v178_v37, 1 }
  0xfc   :  { %vm180_vm8 = vcmp.lt.s32.totalorder %v178_v37, %v179_v38 }
  0xfd   :  { %v237_v39 = vpop.eup %236  ;;  %v181_v40 = vsel %vm180_vm8, %v178_v37, %v179_v38 }
  0xfe   :  { %v239_v41 = vpop.eup %238  ;;  %v152_v42 = vsel %vm136_vm1, %v237_v39, 0.0  ;;  %184 = vst.msk [vmem:[#allocation6] sm:$0x1] %vm182_vm7, %v181_v40 }
  0xff   :  { %v153_v43 = vsel %vm136_vm1, %v239_v41, 0.0 }
 0x100   :  { %273 = shalt.err (!%p270_p9)
}
 0x101   :  { %204 = dma.vmem_to_hbm [thread:$0]  %s202_s2, 16, %s372_s4, [#allocation7]   ;;  %v154_v44 = vadd.f32 %v153_v43, %v152_v42 }
 0x102   :  { %s313_s7 = smov [#allocation5]  }
 0x103   :  { %v155_v45 = vrot.slane %v154_v44, 4  ;;  %s191_s8 = sshll.u32 %s313_s7, 4  ;;  %s192_s8 = int_to_ptr.vmem [resolvable:$true] %s191_s8 }
 0x104   :  { %s282_s9 = scalar_lea.vmem %s192_s8, 16  ;;  %s286_s10 = scalar_lea.vmem %s192_s8, 32 }
 0x105   :  { %v156_v46 = vadd.f32 %v155_v45, %v154_v44  ;;  %p283_p10 = scmp.ne.s32.totalorder %s192_s8, %s282_s9  ;;  %p287_p11 = scmp.lt.s32.totalorder %s192_s8, %s192_s8 }
 0x106   :  { %p288_p12 = scmp.lt.s32.totalorder %s286_s10, %s282_s9 }
 0x107   :  { %v157_v47 = vrot.slane %v156_v46, 2 }
 0x108   :  { %p289_p13 = por %p288_p12, %p287_p11 }
 0x109   :  { %v158_v48 = vadd.f32 %v157_v47, %v156_v46 }
 0x10a   :  { %p290_p0 = pnand %p289_p13, %p283_p10 }
 0x10b   :  { %v159_v49 = vrot.slane %v158_v48, 1 }
 0x10d   :  { %v160_v50 = vadd.f32 %v159_v49, %v158_v48 }
 0x10f   :  { %240 = vrcp.f32 %v160_v50 }
 0x11c   :  { %v241_v51 = vpop.eup %240 }
 0x11d   :  { %183 = vst.msk [vmem:[#allocation5] sm:$0x1] %vm182_vm7, %v241_v51 }
 0x11e   :  { %293 = shalt.err (!%p290_p0)
}
 0x11f   :  { %194 = dma.vmem_to_hbm [thread:$0]  %s192_s8, 16, %s371_s3, [#allocation4]  }
 0x120   :  { %304 = dma.done.wait [#allocation4], 16  }
 0x121   :  { %305 = vsyncadd [#allocation4], 4294967280 }
 0x122   :  { %306 = dma.done.wait [#allocation7], 16  }
 0x123   :  { %307 = vsyncadd [#allocation7], 4294967280 }
 0x124   :  { %211 = vsyncpa [#allocation3], 1 }
 0x125   :  { %212 = vsyncpa [#allocation4], 1 }
 0x126   :  { %213 = vsyncpa [#allocation7], 1 }

</bundles_post_ra>
